<compile_context>
chip_gen: v6e
topology: v6e:2x2x1
jax: 0.10.0
libtpu: 0.0.40
codegen_flags: <defaults>
</compile_context>

<pallas_src>
import functools

import jax
import jax.numpy as jnp
import numpy as np
from jax import lax
from jax.experimental import pallas as pl
from jax.experimental.pallas import tpu as pltpu

EPS = float(jnp.finfo(jnp.float32).eps)


def _make_rope_tables(seq_len, dim_head, base=10000, eps=EPS):
    idx = jnp.arange(seq_len, dtype=jnp.float32)
    scale = 1.0 / (base ** (jnp.arange(0, dim_head, 2, dtype=jnp.float32) / dim_head) + eps)
    pos = jnp.outer(idx, scale)                     # (S, Dh/2)
    pos = jnp.concatenate([pos, pos], axis=-1)      # (S, Dh)
    return jnp.cos(pos), jnp.sin(pos)


def _mha_kernel(x_ref, wqkv_ref, wout_ref, cos_ref, sin_ref, o_ref, *, dim_head):
    S = x_ref.shape[1]
    Dh = dim_head
    half = Dh // 2
    h = pl.program_id(1)

    x = x_ref[0]                                    # (S, E) bf16
    w_h = wqkv_ref[0]                               # (E, 3*Dh) bf16

    # Per-head QKV projection: bf16 on the MXU, f32 accumulation.  The
    # 1/sqrt(dim_k) attention scale is already folded into the Q columns.
    qkv = jnp.dot(x, w_h, preferred_element_type=jnp.float32)        # (S, 3*Dh) f32
    q = qkv[:, :Dh]
    k = qkv[:, Dh:2 * Dh]
    v = qkv[:, 2 * Dh:]

    cos = cos_ref[...]                              # (S, Dh) f32
    sin = sin_ref[...]

    def rope(t):                                    # f32 elementwise (v5e friendly)
        rot = jnp.concatenate([-t[:, half:], t[:, :half]], axis=-1)
        return t * cos + rot * sin

    qr = rope(q).astype(jnp.bfloat16)
    kr = rope(k).astype(jnp.bfloat16)

    # scores = q @ k^T without materializing the transpose: contract both
    # operands over their last dim so the MXU is fed directly (no XLU drain).
    scores = lax.dot_general(
        qr, kr,
        dimension_numbers=(((1,), (1,)), ((), ())),
        preferred_element_type=jnp.float32)                           # (S, S) f32

    # Causal mask + numerically-stable softmax (normalization deferred).
    row = lax.broadcasted_iota(jnp.int32, (S, S), 0)
    col = lax.broadcasted_iota(jnp.int32, (S, S), 1)
    scores = jnp.where(col > row, -jnp.inf, scores)
    m = jnp.max(scores, axis=-1, keepdims=True)
    e = jnp.exp(scores - m)                                           # f32
    denom = jnp.sum(e, axis=-1, keepdims=True)                        # (S, 1)

    # Unnormalized context, then deferred normalization: S*Dh multiplies
    # instead of S*S divisions; the reciprocal runs on the EUP slot.
    ctx = jnp.dot(e.astype(jnp.bfloat16), v.astype(jnp.bfloat16),
                  preferred_element_type=jnp.float32)                 # (S, Dh) f32
    ctx = ctx * pl.reciprocal(denom, approx=True)

    # This head's slice of the output projection; heads accumulate into the
    # full lane-dense (S, E) output block, which stays resident in VMEM across
    # the innermost (head) grid axis and is written back to HBM once per batch.
    contrib = jnp.dot(ctx.astype(jnp.bfloat16), wout_ref[0],
                      preferred_element_type=jnp.float32)             # (S, E) f32

    @pl.when(h == 0)
    def _():
        o_ref[0] = contrib

    @pl.when(h > 0)
    def _():
        o_ref[0] += contrib


def multi_head_attention(x, wqkv, wout, *, seq_len, num_heads, dim_emb):
    B, S, E = x.shape
    assert S == seq_len and E == dim_emb and E % num_heads == 0
    Dh = dim_emb // num_heads
    dim_k = dim_emb                      # PyTorch module default: dim_k = dim_emb
    scale = dim_k ** -0.5

    cos, sin = _make_rope_tables(seq_len, Dh)                         # (S, Dh) f32

    # Host-side weight prep: transpose, fold the attention scale into Wq,
    # regroup per head, cast to bf16 for the MXU.
    wqkv_t = jnp.asarray(wqkv, jnp.float32).T                         # (E, 3E)
    wq = (wqkv_t[:, :E] * scale).reshape(E, num_heads, Dh).transpose(1, 0, 2)
    wk = wqkv_t[:, E:2 * E].reshape(E, num_heads, Dh).transpose(1, 0, 2)
    wv = wqkv_t[:, 2 * E:].reshape(E, num_heads, Dh).transpose(1, 0, 2)
    w_qkv_heads = jnp.concatenate([wq, wk, wv], axis=-1).astype(jnp.bfloat16)   # (H, E, 3Dh)
    w_out_heads = (jnp.asarray(wout, jnp.float32).T
                   .reshape(num_heads, Dh, E).astype(jnp.bfloat16))             # (H, Dh, E)

    x_bf = x.astype(jnp.bfloat16)

    kernel = functools.partial(_mha_kernel, dim_head=Dh)

    return pl.pallas_call(
        kernel,
        out_shape=jax.ShapeDtypeStruct((B, S, E), jnp.float32),
        grid_spec=pltpu.PrefetchScalarGridSpec(
            num_scalar_prefetch=0,
            grid=(B, num_heads),                                      # head = innermost reduction axis
            in_specs=[
                pl.BlockSpec((1, S, E), lambda b, h: (b, 0, 0)),      # x (resident across h)
                pl.BlockSpec((1, E, 3 * Dh), lambda b, h: (h, 0, 0)), # per-head W_qkv
                pl.BlockSpec((1, Dh, E), lambda b, h: (h, 0, 0)),     # per-head W_out
                pl.BlockSpec((S, Dh), lambda b, h: (0, 0)),           # cos
                pl.BlockSpec((S, Dh), lambda b, h: (0, 0)),           # sin
            ],
            out_specs=pl.BlockSpec((1, S, E), lambda b, h: (b, 0, 0)),
        ),
        compiler_params=pltpu.CompilerParams(
            dimension_semantics=("parallel", "arbitrary")),
    )(x_bf, w_qkv_heads, w_out_heads, cos, sin)


def _reference(x, wqkv, wout, *, seq_len, num_heads, dim_emb):
    """Pure-JAX f32 mirror of the PyTorch forward, for verification."""
    B, S, E = x.shape
    dim_head = dim_emb // num_heads
    qkv = x @ wqkv.T
    q, k, v = jnp.split(qkv, 3, axis=-1)

    def to_heads(t):
        return t.reshape(B, S, num_heads, dim_head).transpose(0, 2, 1, 3)

    q, k, v = to_heads(q), to_heads(k), to_heads(v)
    cos, sin = _make_rope_tables(seq_len, dim_head)

    def rope(t):
        half = dim_head // 2
        rot = jnp.concatenate([-t[..., half:], t[..., :half]], axis=-1)
        return t * cos[None, None] + rot * sin[None, None]

    q, k = rope(q), rope(k)
    scores = jnp.einsum('bhqd,bhkd->bhqk', q, k) * (dim_emb ** -0.5)
    mask = jnp.triu(jnp.ones((S, S), dtype=bool), 1)
    scores = jnp.where(mask[None, None], -jnp.inf, scores)
    p = jax.nn.softmax(scores, axis=-1)
    out = jnp.einsum('bhqk,bhkd->bhqd', p, v)
    out = out.transpose(0, 2, 1, 3).reshape(B, S, E)
    return out @ wout.T


if __name__ == "__main__":
    # Small shapes consistent with the module.
    B, S, H, E = 2, 8, 4, 32          # batch, seq_len, num_heads, dim_emb

    key = jax.random.PRNGKey(0)
    kx, kqkv, kout = jax.random.split(key, 3)

    x = jax.random.normal(kx, (B, S, E), dtype=jnp.float32)
    # Deterministic "Linear" weights (PyTorch-style uniform(-1/sqrt(E), 1/sqrt(E))).
    bound = 1.0 / np.sqrt(E)
    wqkv = jax.random.uniform(kqkv, (3 * E, E), jnp.float32, -bound, bound)
    wout = jax.random.uniform(kout, (E, E), jnp.float32, -bound, bound)

    out = multi_head_attention(x, wqkv, wout, seq_len=S, num_heads=H, dim_emb=E)
    out = jax.block_until_ready(out)

    ref = _reference(x, wqkv, wout, seq_len=S, num_heads=H, dim_emb=E)
    # Tolerance accounts for bf16 matmul operands (f32 accumulation) and the
    # approximate EUP reciprocal used for the deferred softmax normalization.
    np.testing.assert_allclose(np.asarray(out), np.asarray(ref), atol=2e-2, rtol=2e-2)

    print("KERNEL_OK")
</pallas_src>

<mosaic_0001>
module attributes {stable_mosaic.version = 11 : i64} {
  func.func @_mha_kernel(%arg0: i32, %arg1: i32, %arg2: memref<1x8x32xbf16, #tpu.memory_space<vmem>>, %arg3: memref<1x32x24xbf16, #tpu.memory_space<vmem>>, %arg4: memref<1x8x32xbf16, #tpu.memory_space<vmem>>, %arg5: memref<8x8xf32, #tpu.memory_space<vmem>>, %arg6: memref<8x8xf32, #tpu.memory_space<vmem>>, %arg7: memref<1x8x32xf32, #tpu.memory_space<vmem>>) attributes {dimension_semantics = [#tpu.dimension_semantics<parallel>, #tpu.dimension_semantics<arbitrary>], iteration_bounds = array<i64: 2, 4>, scalar_prefetch = 0 : i64, scratch_operands = 0 : i64, tpu.core_type = #tpu.core_type<tc>, window_params = [{transform_indices = @transform_0, window_bounds = array<i64: 1, 8, 32>}, {transform_indices = @transform_1, window_bounds = array<i64: 1, 32, 24>}, {transform_indices = @transform_2, window_bounds = array<i64: 1, 8, 32>}, {pipeline_mode = #tpu.pipeline_mode<synchronous>, transform_indices = @transform_3, window_bounds = array<i64: 8, 8>}, {pipeline_mode = #tpu.pipeline_mode<synchronous>, transform_indices = @transform_4, window_bounds = array<i64: 8, 8>}, {transform_indices = @transform_5, window_bounds = array<i64: 1, 8, 32>}]} {
    %c0 = arith.constant 0 : index
    %c0_0 = arith.constant 0 : index
    %c0_1 = arith.constant 0 : index
    %0 = vector.load %arg2[%c0, %c0_0, %c0_1] : memref<1x8x32xbf16, #tpu.memory_space<vmem>>, vector<1x8x32xbf16>
    %1 = vector.shape_cast %0 : vector<1x8x32xbf16> to vector<8x32xbf16>
    %c0_2 = arith.constant 0 : index
    %c0_3 = arith.constant 0 : index
    %c0_4 = arith.constant 0 : index
    %2 = vector.load %arg3[%c0_2, %c0_3, %c0_4] : memref<1x32x24xbf16, #tpu.memory_space<vmem>>, vector<1x32x24xbf16>
    %3 = vector.shape_cast %2 : vector<1x32x24xbf16> to vector<32x24xbf16>
    %cst = arith.constant dense<0.000000e+00> : vector<8x24xf32>
    %4 = tpu.matmul %1, %3, %cst {dimension_numbers = #tpu.dot_dimension_numbers<[1], [0], [0], [1], [0, 0, 1, 1], [], []>} : vector<8x32xbf16>, vector<32x24xbf16>, vector<8x24xf32> -> vector<8x24xf32>
    %5 = vector.extract_strided_slice %4 {offsets = [0, 0], sizes = [8, 8], strides = [1, 1]} : vector<8x24xf32> to vector<8x8xf32>
    %6 = vector.extract_strided_slice %4 {offsets = [0, 8], sizes = [8, 8], strides = [1, 1]} : vector<8x24xf32> to vector<8x8xf32>
    %7 = vector.extract_strided_slice %4 {offsets = [0, 16], sizes = [8, 8], strides = [1, 1]} : vector<8x24xf32> to vector<8x8xf32>
    %c0_5 = arith.constant 0 : index
    %c0_6 = arith.constant 0 : index
    %8 = vector.load %arg5[%c0_5, %c0_6] : memref<8x8xf32, #tpu.memory_space<vmem>>, vector<8x8xf32>
    %c0_7 = arith.constant 0 : index
    %c0_8 = arith.constant 0 : index
    %9 = vector.load %arg6[%c0_7, %c0_8] : memref<8x8xf32, #tpu.memory_space<vmem>>, vector<8x8xf32>
    %10 = vector.extract_strided_slice %5 {offsets = [0, 4], sizes = [8, 4], strides = [1, 1]} : vector<8x8xf32> to vector<8x4xf32>
    %cst_9 = arith.constant 0.000000e+00 : f32
    %11 = vector.broadcast %cst_9 : f32 to vector<8x4xf32>
    %12 = arith.subf %11, %10 : vector<8x4xf32>
    %13 = vector.extract_strided_slice %5 {offsets = [0, 0], sizes = [8, 4], strides = [1, 1]} : vector<8x8xf32> to vector<8x4xf32>
    %14 = tpu.concatenate %12, %13 in 1 : vector<8x4xf32>, vector<8x4xf32> -> vector<8x8xf32>
    %15 = arith.mulf %5, %8 : vector<8x8xf32>
    %16 = arith.mulf %14, %9 : vector<8x8xf32>
    %17 = arith.addf %15, %16 : vector<8x8xf32>
    %18 = arith.truncf %17 : vector<8x8xf32> to vector<8x8xbf16>
    %19 = vector.extract_strided_slice %6 {offsets = [0, 4], sizes = [8, 4], strides = [1, 1]} : vector<8x8xf32> to vector<8x4xf32>
    %cst_10 = arith.constant 0.000000e+00 : f32
    %20 = vector.broadcast %cst_10 : f32 to vector<8x4xf32>
    %21 = arith.subf %20, %19 : vector<8x4xf32>
    %22 = vector.extract_strided_slice %6 {offsets = [0, 0], sizes = [8, 4], strides = [1, 1]} : vector<8x8xf32> to vector<8x4xf32>
    %23 = tpu.concatenate %21, %22 in 1 : vector<8x4xf32>, vector<8x4xf32> -> vector<8x8xf32>
    %24 = arith.mulf %6, %8 : vector<8x8xf32>
    %25 = arith.mulf %23, %9 : vector<8x8xf32>
    %26 = arith.addf %24, %25 : vector<8x8xf32>
    %27 = arith.truncf %26 : vector<8x8xf32> to vector<8x8xbf16>
    %cst_11 = arith.constant dense<0.000000e+00> : vector<8x8xf32>
    %28 = tpu.matmul %18, %27, %cst_11 {dimension_numbers = #tpu.dot_dimension_numbers<[1], [1], [0], [0], [0, 0, 1, 0], [], []>} : vector<8x8xbf16>, vector<8x8xbf16>, vector<8x8xf32> -> vector<8x8xf32>
    %29 = tpu.iota {dimensions = array<i32: 0>} : vector<8x8xi32>
    %30 = tpu.iota {dimensions = array<i32: 1>} : vector<8x8xi32>
    %31 = arith.cmpi sgt, %30, %29 : vector<8x8xi32>
    %cst_12 = arith.constant 0xFF800000 : f32
    %32 = vector.broadcast %cst_12 : f32 to vector<8x8xf32>
    %33 = arith.select %31, %32, %28 : vector<8x8xi1>, vector<8x8xf32>
    %cst_13 = arith.constant dense<0xFF800000> : vector<8xf32>
    %34 = vector.multi_reduction <maximumf>, %33, %cst_13 [1] : vector<8x8xf32> to vector<8xf32>
    %35 = vector.shape_cast %34 : vector<8xf32> to vector<8x1xf32>
    %36 = vector.broadcast %35 : vector<8x1xf32> to vector<8x8xf32>
    %37 = arith.subf %33, %36 : vector<8x8xf32>
    %38 = math.exp %37 : vector<8x8xf32>
    %cst_14 = arith.constant dense<0.000000e+00> : vector<8xf32>
    %39 = vector.multi_reduction <add>, %38, %cst_14 [1] : vector<8x8xf32> to vector<8xf32>
    %40 = vector.shape_cast %39 : vector<8xf32> to vector<8x1xf32>
    %41 = arith.truncf %38 : vector<8x8xf32> to vector<8x8xbf16>
    %42 = arith.truncf %7 : vector<8x8xf32> to vector<8x8xbf16>
    %cst_15 = arith.constant dense<0.000000e+00> : vector<8x8xf32>
    %43 = tpu.matmul %41, %42, %cst_15 {dimension_numbers = #tpu.dot_dimension_numbers<[1], [0], [0], [1], [0, 0, 1, 1], [], []>} : vector<8x8xbf16>, vector<8x8xbf16>, vector<8x8xf32> -> vector<8x8xf32>
    %44 = tpu.reciprocal %40 {approx = true} : vector<8x1xf32> -> vector<8x1xf32>
    %45 = vector.broadcast %44 : vector<8x1xf32> to vector<8x8xf32>
    %46 = arith.mulf %43, %45 : vector<8x8xf32>
    %47 = arith.truncf %46 : vector<8x8xf32> to vector<8x8xbf16>
    %c0_16 = arith.constant 0 : index
    %c0_17 = arith.constant 0 : index
    %c0_18 = arith.constant 0 : index
    %48 = vector.load %arg4[%c0_16, %c0_17, %c0_18] : memref<1x8x32xbf16, #tpu.memory_space<vmem>>, vector<1x8x32xbf16>
    %49 = vector.shape_cast %48 : vector<1x8x32xbf16> to vector<8x32xbf16>
    %cst_19 = arith.constant dense<0.000000e+00> : vector<8x32xf32>
    %50 = tpu.matmul %47, %49, %cst_19 {dimension_numbers = #tpu.dot_dimension_numbers<[1], [0], [0], [1], [0, 0, 1, 1], [], []>} : vector<8x8xbf16>, vector<8x32xbf16>, vector<8x32xf32> -> vector<8x32xf32>
    %c0_i32 = arith.constant 0 : i32
    %51 = arith.cmpi eq, %arg1, %c0_i32 : i32
    %52 = arith.extui %51 : i1 to i32
    %c0_i32_20 = arith.constant 0 : i32
    %53 = arith.cmpi ne, %52, %c0_i32_20 : i32
    scf.if %53 {
      %c0_23 = arith.constant 0 : index
      %c0_24 = arith.constant 0 : index
      %c0_25 = arith.constant 0 : index
      %57 = vector.load %arg7[%c0_23, %c0_24, %c0_25] : memref<1x8x32xf32, #tpu.memory_space<vmem>>, vector<1x8x32xf32>
      %58 = vector.shape_cast %57 : vector<1x8x32xf32> to vector<8x32xf32>
      %59 = vector.shape_cast %50 : vector<8x32xf32> to vector<1x8x32xf32>
      tpu.vector_store %arg7[%c0_23, %c0_24, %c0_25], %59 {strides = array<i32>} : memref<1x8x32xf32, #tpu.memory_space<vmem>>, vector<1x8x32xf32>,
    } else {
    }
    %c0_i32_21 = arith.constant 0 : i32
    %54 = arith.cmpi sgt, %arg1, %c0_i32_21 : i32
    %55 = arith.extui %54 : i1 to i32
    %c0_i32_22 = arith.constant 0 : i32
    %56 = arith.cmpi ne, %55, %c0_i32_22 : i32
    scf.if %56 {
      %c0_23 = arith.constant 0 : index
      %c0_24 = arith.constant 0 : index
      %c0_25 = arith.constant 0 : index
      %57 = vector.load %arg7[%c0_23, %c0_24, %c0_25] : memref<1x8x32xf32, #tpu.memory_space<vmem>>, vector<1x8x32xf32>
      %58 = vector.shape_cast %57 : vector<1x8x32xf32> to vector<8x32xf32>
      %59 = arith.addf %58, %50 : vector<8x32xf32>
      %c0_26 = arith.constant 0 : index
      %c0_27 = arith.constant 0 : index
      %c0_28 = arith.constant 0 : index
      %60 = vector.load %arg7[%c0_26, %c0_27, %c0_28] : memref<1x8x32xf32, #tpu.memory_space<vmem>>, vector<1x8x32xf32>
      %61 = vector.shape_cast %60 : vector<1x8x32xf32> to vector<8x32xf32>
      %62 = vector.shape_cast %59 : vector<8x32xf32> to vector<1x8x32xf32>
      tpu.vector_store %arg7[%c0_26, %c0_27, %c0_28], %62 {strides = array<i32>} : memref<1x8x32xf32, #tpu.memory_space<vmem>>, vector<1x8x32xf32>,
    } else {
    }
    return
  }
  func.func @transform_0(%arg0: i32, %arg1: i32) -> (i32, i32, i32) {
    %c0_i32 = arith.constant 0 : i32
    %c0_i32_0 = arith.constant 0 : i32
    %c0_i32_1 = arith.constant 0 : i32
    return %arg0, %c0_i32, %c0_i32_0 : i32, i32, i32
  }
  func.func @transform_1(%arg0: i32, %arg1: i32) -> (i32, i32, i32) {
    %c0_i32 = arith.constant 0 : i32
    %c0_i32_0 = arith.constant 0 : i32
    %c0_i32_1 = arith.constant 0 : i32
    return %arg1, %c0_i32, %c0_i32_0 : i32, i32, i32
  }
  func.func @transform_2(%arg0: i32, %arg1: i32) -> (i32, i32, i32) {
    %c0_i32 = arith.constant 0 : i32
    %c0_i32_0 = arith.constant 0 : i32
    %c0_i32_1 = arith.constant 0 : i32
    return %arg1, %c0_i32, %c0_i32_0 : i32, i32, i32
  }
  func.func @transform_3(%arg0: i32, %arg1: i32) -> (i32, i32) {
    %c0_i32 = arith.constant 0 : i32
    %c0_i32_0 = arith.constant 0 : i32
    %c0_i32_1 = arith.constant 0 : i32
    return %c0_i32, %c0_i32_0 : i32, i32
  }
  func.func @transform_4(%arg0: i32, %arg1: i32) -> (i32, i32) {
    %c0_i32 = arith.constant 0 : i32
    %c0_i32_0 = arith.constant 0 : i32
    %c0_i32_1 = arith.constant 0 : i32
    return %c0_i32, %c0_i32_0 : i32, i32
  }
  func.func @transform_5(%arg0: i32, %arg1: i32) -> (i32, i32, i32) {
    %c0_i32 = arith.constant 0 : i32
    %c0_i32_0 = arith.constant 0 : i32
    %c0_i32_1 = arith.constant 0 : i32
    return %arg0, %c0_i32, %c0_i32_0 : i32, i32, i32
  }
}

</mosaic_0001>

<bundles_post_ra>
// kernel: tpu_custom_call.1
= control target key start
LH: loop header
LB: loop body
LE: loop exit
PB: predicated region body
PF: predicated region fallthrough
CT: control target
= control target key end

     0   :  { %10 = vsyncpa [#allocation3], 0  ;;  %s1106_s0 = inlined_call_operand.vmem [shape: bf16[2,8,32], index: 0, kind: input, shape index: {}]   ;;  %s1107_s1 = inlined_call_operand.vmem [shape: bf16[4,32,24], index: 1, kind: input, shape index: {}]   ;;  %s1108_s2 = inlined_call_operand.vmem [shape: bf16[4,8,32], index: 2, kind: input, shape index: {}]   ;;  %s1109_s3 = inlined_call_operand.vmem [shape: f32[8,8], index: 3, kind: input, shape index: {}]   ;;  %s1110_s4 = inlined_call_operand.vmem [shape: f32[8,8], index: 4, kind: input, shape index: {}]   ;;  %s1111_s5 = inlined_call_operand.hbm [shape: f32[2,8,32], index: 5, kind: output, shape index: {}]  }
   0x1   :  { %12 = vsyncpa [#allocation3 + $0x1], 0  ;;  %s930_s18 = smov 0   ;;  %s932_s19 = smov 0  }
   0x2   :  { %s934_s20 = smov 0   ;;  %s936_s21 = smov 0  }
   0x3   :  { %s938_s22 = smov 0   ;;  %s940_s23 = smov 0  }
   0x4   :  { %s942_s24 = smov 0   ;;  %s944_s25 = smov 0  }
   0x5 LB: > { %s654_s26 = sadd.s32 4294967295, %s889_s25   ;;  %s655_s27 = sadd.s32 4294967294, %s889_s25   ;;  %s889_s25 = sphi %s944_s25, %s18_s25   ;;  %s885_s24 = sphi %s942_s24, %s1122_s24   ;;  %s881_s23 = sphi %s940_s23, %s1121_s23   ;;  %s877_s22 = sphi %s938_s22, %s1120_s22   ;;  %s873_s21 = sphi %s936_s21, %s1119_s21   ;;  %s869_s20 = sphi %s934_s20, %s1118_s20   ;;  %s865_s19 = sphi %s932_s19, %s1117_s19   ;;  %s861_s18 = sphi %s930_s18, %s1116_s18  }
   0x6   : > { %s27_s28 = sadd.s32 1, %s881_s23  ;;  %s30_s29 = sadd.s32 1, %s885_s24 }
   0x7   : > { %p28_p0 = scmp.ge.s32.totalorder %s27_s28, 4  ;;  %p167_p1 = scmp.ne.s32.totalorder %s869_s20, %s865_s19 }
   0x8   : > { %p168_p2 = scmp.eq.s32.totalorder %s654_s26, 7  ;;  %p173_p4 = scmp.ne.s32.totalorder %s865_s19, %s861_s18 }
   0x9   : > { %s1124_s28 = smov (%p28_p0, %s27_s28), 0  ;;  %s1126_s29 = smov (!%p28_p0, %s30_s29), %s885_s24 }
   0xa   : > { %p979_p3 = por %p168_p2, %p167_p1  ;;  %p32_p5 = scmp.ge.s32.totalorder %s1126_s29, 2 }
   0xb   : > { %p174_p6 = scmp.eq.s32.totalorder %s655_s27, 7  ;;  %p658_p7 = scmp.ge.s32.totalorder %s889_s25, 1 }
   0xc   : > { %p220_p8 = scmp.lt.s32.totalorder %s889_s25, 9  ;;  %s1128_s29 = smov (%p32_p5, %s1126_s29), 0 }
   0xd   : > { %p989_p9 = por %p174_p6, %p173_p4  ;;  %s154_s7 = ssub.s32 %s885_s24, %s1128_s29 }
   0xe   : > { %p221_p10 = pnand %p658_p7, %p220_p8  ;;  %s157_s8 = sadd.s32 1, %s869_s20 }
   0xf   : > { %p155_p11 = scmp.eq.s32.totalorder %s154_s7, 0  ;;  %s1112_s10 = sand.u32 (!%p221_p10), 1, %s865_s19  }
  0x10   : > { %224 = sbr.rel (%p221_p10) target bundleno = 1380 (0x564), region = 40  ;;  %p260_p12 = scmp.lt.s32.totalorder (!%p221_p10), %s873_s21, 3 }
  0x11   : > { %s997_s9 = scalar_select %p155_p11, %s869_s20, %s157_s8  }
  0x12   : > { %s1008_s13 = sshll.u32 (!%p221_p10), %s1112_s10, 3  ;;  %p256_p13 = scmp.lt.s32.totalorder (!%p221_p10), %s877_s22, 1 }
  0x13   : > { %s893_s15 = smov (!%p221_p10), 8   ;;  %s896_s27 = smov (!%p221_p10), 120  }
  0x14   : > { %p670_p0 = scmp.ne.s32.totalorder (!%p221_p10), %s873_s21, 0 }
  0x15   : > { %v1004_v0 = vld [vmem:[%s1109_s3] sm:$0xff]  ;;  %v891_v1 = vmov 0.0   ;;  %vm892_vm0 = vmmov 0   ;;  %s1018_s14 = scalar_select %p260_p12, %s873_s21, 3  ;;  %vm287_vm1 = vcmask 261120   ;;  %vm342_vm2 = vcmask 31744  }
  0x16   : > { %686 = vmatprep.subr.bf16.mxu0 %v891_v1  ;;  %690 = vmatprep.mubr.msk.bf16.mxu0 %vm892_vm0, %v891_v1  ;;  %s257_s16 = scalar_select %p256_p13, %s877_s22, 1  ;;  %v332_v11 = vld [vmem:[%s1110_s4] sm:$0xff]  ;;  %vm370_vm3 = vcmask 64512   ;;  %vm440_vm4 = vcmask 1043456   ;;  %v417_v34 = vlaneseq }
  0x17   : > { %694 = vmatprep.subr.bf16.mxu1 %v891_v1  ;;  %696 = vmatprep.mubr.msk.bf16.mxu1 %vm892_vm0, %v891_v1  ;;  %s676_s17 = sshll.u32 %s1018_s14, 4  ;;  %s663_s11 = sshll.u32 %s1018_s14, 2 }
  0x18   : > { %356 = vrot.lane.b32.xlu1 %v1004_v0, %s893_s15  ;;  %s264_s7 = scalar_lea.vmem %s1107_s1, %s676_s17  ;;  %s660_s8 = sshll.u32 %s257_s16, 2  ;;  %v418_v35 = vshrl.u32 %v417_v34, 7  ;;  %v420_v36 = vand.u32 127, %v417_v34 }
  0x19   : > { %v791_v2 = vld [vmem:[%s264_s7 + $0x8] sm:$0xff]   ;;  %v792_v3 = vld [vmem:[%s264_s7] sm:$0xff]   ;;  %s259_s10 = scalar_lea.vmem %s1106_s0, %s660_s8  ;;  %s894_s16 = smov 116  }
  0x1a   : > { %687 = vmatpush3.bf16.msra.mxu0 %v791_v2  ;;  %v270_v4 = vld [vmem:[%s259_s10] sm:$0xf]  ;;  %s895_s17 = smov 124   ;;  %s897_s7 = smov 4   ;;  %vm421_vm5 = vcmp.gt.s32.totalorder %v420_v36, %v418_v35 }
  0x1b   : > { %688 = vmatprep.subr.bf16.mxu0 %v891_v1  ;;  %s898_s8 = smov 112   ;;  %s255_s14 = scalar_lea.vmem [#allocation2], %s1008_s13 }
  0x1e   : > { %689 = vmatpush3.bf16.msra.mxu0 %v792_v3 }
  0x1f   : > { %700 = vmatprep.subr.bf16.mxu0 %v891_v1 }
  0x21   : > { %691 = vmatmul.mubr.msk.bf16.vlgmr.msra.gmra.mxu0 %vm287_vm1, %v270_v4 }
  0x22   : > { %702 = vmatprep.mubr.msk.bf16.mxu0 %vm892_vm0, %v891_v1 }
  0x8a   : > { %v357_v15 = vpop.permute.xlu1 %356 }
  0xe1   : > { %v325_v5 = vpop.f32.mrf.mxu0 }
  0xe2   : > { %v333_v6 = vsub.f32 0.0, %v325_v5  ;;  %v359_v16 = vmul.f32 %v357_v15, %v325_v5  ;;  %v433_v20 = vpack.c.bf16 %v325_v5, %v325_v5  ;;  %v344_v26 = vmul.f32 %v1004_v0, %v325_v5 }
  0xe3   : > { %v692_v7 = vpop.f32.mrf.mxu0 }
  0xe4   : > { %348 = vrot.lane.b32.xlu0 %v333_v6, %s894_s16  ;;  %s268_s16 = scalar_lea.vmem %s1108_s2, %s663_s11 }
  0xe5   : > { %v328_v8 = vpop.f32.mrf.mxu0  ;;  %v487_v28 = vld [vmem:[%s268_s16] sm:$0xf] }
  0xe6   : > { %v492_v33 = vsel %vm440_vm4, %v487_v28, 0 }
  0xe7   : > { %v693_v9 = vpop.f32.mrf.mxu0 }
  0xe8   : > { %351 = vrot.lane.b32.xlu0 %v325_v5, %s895_s17 }
 0x156   : > { %v349_v10 = vpop.permute.xlu0 %348 }
 0x15a   : > { %v352_v12 = vpop.permute.xlu0 %351 }
 0x15b   : > { %v354_v13 = vsel %vm342_vm2, %v349_v10, %v352_v12 }
 0x15c   : > { %v360_v14 = vmul.f32 %v354_v13, %v332_v11 }
 0x15e   : > { %362 = vrot.lane.b32.xlu1 %v360_v14, %s893_s15 }
 0x162   : > { %335 = vrot.lane.b32.xlu1 %v333_v6, %s895_s17 }
 0x1d0   : > { %v363_v17 = vpop.permute.xlu1 %362 }
 0x1d1   : > { %v365_v18 = vadd.f32 %v363_v17, %v359_v16 }
 0x1d3   : > { %v366_v19 = vpack.c.bf16 %v365_v18, %v365_v18 }
 0x1d4   : > { %v336_v23 = vpop.permute.xlu1 %335 }
 0x1d5   : > { %368 = vrot.lane.b32.xlu0 %v366_v19, %s896_s27 }
 0x1d9   : > { %339 = vrot.lane.b32.xlu0 %v325_v5, %s897_s7 }
 0x1dd   : > { %435 = vrot.lane.b32.xlu0 %v433_v20, %s898_s8 }
 0x247   : > { %v369_v21 = vpop.permute.xlu0 %368 }
 0x248   : > { %v375_v22 = vsel %vm370_vm3, %v369_v21, 0 }
 0x249   : > { %695 = vmatpush3.bf16.xpose.msra.mxu1 %v375_v22 }
 0x24a   : > { %706 = vmatprep.subr.bf16.mxu1 %v891_v1 }
 0x24b   : > { %v340_v24 = vpop.permute.xlu0 %339 }
 0x24c   : > { %v343_v25 = vsel %vm342_vm2, %v336_v23, %v340_v24 }
 0x24d   : > { %v345_v27 = vmul.f32 %v343_v25, %v332_v11 }
 0x24f   : > { %v346_v29 = vadd.f32 %v345_v27, %v344_v26  ;;  %v436_v30 = vpop.permute.xlu0 %435 }
 0x250   : > { %v442_v31 = vsel %vm440_vm4, %v436_v30, 0 }
 0x251   : > { %v347_v32 = vpack.c.bf16 %v346_v29, %v346_v29  ;;  %701 = vmatpush3.bf16.msra.mxu0 %v442_v31 }
 0x253   : > { %697 = vmatmul.mubr.msk.bf16.vlgmr.msra.gmra.mxu1 %vm370_vm3, %v347_v32 }
 0x254   : > { %707 = vmatpush3.bf16.msra.mxu1 %v492_v33  ;;  %708 = vmatprep.mubr.msk.bf16.mxu1 %vm892_vm0, %v891_v1 }
 0x313   : > { %v411_v37 = vpop.f32.mrf.mxu1 }
 0x314   : > { %v422_v38 = vsel %vm421_vm5, -inf, %v411_v37 }
 0x315   : > { %v698_v39 = vpop.f32.mrf.mxu1  ;;  %v423_v40 = vsel %vm370_vm3, %v422_v38, -inf }
 0x316   : > { %424 = vmax.xlane.f32.xlu1 %v423_v40 }
 0x317   : > { %v414_v41 = vpop.f32.mrf.mxu1 }
 0x319   : > { %v699_v42 = vpop.f32.mrf.mxu1 }
 0x39f   : > { %v425_v43 = vpop.xlane.xlu1 %424 }
 0x3a0   : > { %v426_v44 = vsub.f32 %v422_v38, %v425_v43 }
 0x3a2   : > { %v427_v45 = vmul.f32 1.442695, %v426_v44 }
 0x3a4   : > { %793 = vpow2.f32 %v427_v45 }
 0x3b1   : > { %v794_v46 = vpop.eup %793 }
 0x3b2   : > { %v429_v47 = vsel %vm370_vm3, %v794_v46, 0.0  ;;  %v432_v48 = vpack.c.bf16 %v794_v46, %v794_v46 }
 0x3b3   : > { %430 = vadd.xlane.f32.xlu0 %v429_v47 }
 0x3b4   : > { %703 = vmatmul.mubr.msk.bf16.vlgmr.msra.gmra.mxu0 %vm370_vm3, %v432_v48 }
 0x43c   : > { %v431_v49 = vpop.xlane.xlu0 %430 }
 0x43d   : > { %795 = vrcp.f32 %v431_v49 }
 0x44a   : > { %v796_v50 = vpop.eup %795 }
 0x474   : > { %v478_v51 = vpop.f32.mrf.mxu0 }
 0x475   : > { %v485_v52 = vmul.f32 %v796_v50, %v478_v51 }
 0x476   : > { %v704_v53 = vpop.f32.mrf.mxu0 }
 0x477   : > { %v486_v54 = vpack.c.bf16 %v485_v52, %v485_v52 }
 0x478   : > { %v481_v55 = vpop.f32.mrf.mxu0 }
 0x479   : > { %709 = vmatmul.mubr.msk.bf16.vlgmr.msra.gmra.mxu1 %vm370_vm3, %v486_v54 }
 0x47a   : > { %v705_v56 = vpop.f32.mrf.mxu0 }
 0x539   : > { %v528_v57 = vpop.f32.mrf.mxu1 }
 0x53b   : > { %v710_v58 = vpop.f32.mrf.mxu1  ;;  %537 = sbr.rel (%p670_p0) target bundleno = 1345 (0x541), region = 44 }
 0x53d   : > { %v531_v59 = vpop.f32.mrf.mxu1 }
 0x53f   : > { %v711_v60 = vpop.f32.mrf.mxu1 }
 0x540   : > { %538 = vst.msk [vmem:[%s255_s14] sm:$0xff] %vm287_vm1, %v528_v57 }
 0x541 PF: > { %p671_p1 = scmp.le.s32.totalorder %s873_s21, 0 }
 0x543   : > { %542 = sbr.rel (%p671_p1) target bundleno = 1356 (0x54c), region = 48 }
 0x548   : > { %v543_v61 = vld [vmem:[%s255_s14] sm:$0xff] }
 0x549   : > { %v544_v62 = vadd.f32 %v543_v61, %v528_v57 }
 0x54b   : > { %545 = vst.msk [vmem:[%s255_s14] sm:$0xff] %vm287_vm1, %v544_v62 }
 0x54c PF: > { %s673_s17 = sshll.u32 %s877_s22, 7  ;;  %s560_s27 = sshll.u32 %s255_s14, 4  ;;  %s561_s27 = int_to_ptr.vmem [resolvable:$true] %s560_s27 }
 0x54d   : > { %s558_s26 = scalar_lea.hbm %s1111_s5, %s673_s17  ;;  %s1115_s7 = sand.u32 1, %s865_s19  }
 0x54e   : > { %s547_s8 = scalar_lea.sflag [#allocation3], %s1115_s7  ;;  %s797_s11 = scalar_lea.vmem %s561_s27, 128 }
 0x54f   : > { %p798_p2 = scmp.ne.s32.totalorder %s561_s27, %s797_s11  ;;  %s899_s21 = smov [#allocation2]  }
 0x550   : > { %s801_s15 = sshll.u32 %s899_s21, 4  ;;  %s802_s15 = int_to_ptr.vmem [resolvable:$false] %s801_s15 }
 0x551   : > { %p799_p4 = pnand %p798_p2, %p979_p3  ;;  %s803_s12 = scalar_lea.vmem %s802_s15, 256 }
 0x552   : > { %p804_p6 = scmp.lt.s32.totalorder %s561_s27, %s802_s15  ;;  %p805_p7 = scmp.lt.s32.totalorder %s803_s12, %s797_s11 }
 0x553   : > { %p800_p5 = pneg %p799_p4 }
 0x554   : > { %p806_p8 = por %p805_p7, %p804_p6 }
 0x556   : > { %p807_p10 = pnand %p806_p8, %p800_p5 }
 0x558   : > { %810 = shalt.err (!%p807_p10)
}
 0x559   : > { %s811_s22 = scalar_lea.hbm %s558_s26, 128  ;;  %s815_s17 = scalar_lea.hbm %s1111_s5, 256 }
 0x55a   : > { %p812_p11 = scmp.ne.s32.totalorder %s558_s26, %s811_s22  ;;  %p816_p0 = scmp.lt.s32.totalorder %s558_s26, %s1111_s5 }
 0x55b   : > { %p817_p1 = scmp.lt.s32.totalorder %s815_s17, %s811_s22 }
 0x55c   : > { %p813_p12 = pnand %p812_p11, %p979_p3 }
 0x55d   : > { %p818_p2 = por %p817_p1, %p816_p0 }
 0x55e   : > { %p814_p13 = pneg %p813_p12 }
 0x560   : > { %p819_p4 = pnand %p818_p2, %p814_p13 }
 0x562   : > { %822 = shalt.err (!%p819_p4)
}
 0x563   : > { %712 = dma.vmem_to_hbm [thread:$0]  (%p979_p3), %s561_s27, 128, %s558_s26, %s547_s8  }
 0x564 PF: > { %p718_p5 = scmp.ge.s32.totalorder %s889_s25, 2  ;;  %s572_s7 = sand.u32 1, %s861_s18  }
 0x565   : > { %s573_s11 = scalar_lea.sflag [#allocation3], %s572_s7 }
 0x566   : > { %p715_p6 = pnand %p718_p5, %p989_p9 }
 0x568   : > { %p716_p7 = pneg %p715_p6 }
 0x56a   : > { %856 = dma.done.wait (%p716_p7), %s573_s11, 128  }
 0x56b   : > { %858 = vsyncadd (%p716_p7), %s573_s11, 4294967168  ;;  %s18_s25 = sadd.s32 1, %s889_s25   ;;  %s1116_s18 = smov %s865_s19 }
 0x56c   : > { %p15_p8 = scmp.ge.s32.totalorder %s18_s25, 10   ;;  %s1117_s19 = smov %s869_s20 }
 0x56d   : > { %s1118_s20 = smov %s997_s9  ;;  %s1119_s21 = smov %s881_s23 }
 0x56e   : > { %s1120_s22 = smov %s885_s24  ;;  %s1121_s23 = smov %s1124_s28 }
 0x56f   : > { %s1122_s24 = smov %s1128_s29  ;;  %17 = sbr.rel (!%p15_p8) target bundleno = 5 (0x5), region = 89 }
 0x574   :  { %578 = vsyncpa [#allocation3], 1 }
 0x575   :  { %580 = vsyncpa [#allocation3 + $0x1], 1 }

</bundles_post_ra>
